<compile_context>
chip_gen: v5e
topology: v5e:2x2
jax: 0.10.0
libtpu: 0.0.40
codegen_flags: <defaults>
</compile_context>

<pallas_src>
import math

import jax
import jax.numpy as jnp
from jax.experimental import pallas as pl
from jax.experimental.pallas import tpu as pltpu


def _round_up(v: int, m: int) -> int:
    return ((v + m - 1) // m) * m


def _attn_pool_kernel(x_ref, m_ref, w1_ref, b1_ref, w2t_ref, b2_ref, o_ref):
    tb, s, d = x_ref.shape
    h2 = w1_ref.shape[1]

    x = x_ref[...]                                   # (TB, S, D) f32
    # Layout-free reshape: S is a multiple of 8, so each batch row's (S, D)
    # tile already sits at the same (sublane, lane) positions as (TB*S, D).
    xf = x.reshape(tb * s, d)

    # fc1 + tanh: one tall MXU matmul per tile.
    e = jnp.tanh(
        jnp.dot(xf, w1_ref[...], preferred_element_type=jnp.float32)
        + b1_ref[...]
    )                                                # (TB*S, H2)

    # fc2 has output width 1 -> VPU multiply + lane reduce (an N=1 MXU matmul
    # would waste the systolic array).  The reduce lands the logits directly
    # in (TB, S) lane-major layout, matching the mask block, so exp / mask /
    # normalization run lane-dense with no mask relayout.
    e3 = e.reshape(tb, s, h2)                        # layout-free (S % 8 == 0)
    w2b = w2t_ref[...].reshape(1, 1, h2)
    logit = jnp.sum(e3 * w2b, axis=-1) + b2_ref[...]      # (TB, S)
    alpha = jnp.exp(logit) * m_ref[...]                   # (TB, S) masked

    # Per-batch normalization over the sequence axis (lane reduce).
    denom = jnp.sum(alpha, axis=-1, keepdims=True) + 1e-8  # (TB, 1)
    inv = pl.reciprocal(denom, approx=True)                 # EUP slot
    inv = inv * (2.0 - denom * inv)                         # one Newton step
    alpha = alpha * inv                                      # (TB, S)

    # pooled[b, :] = sum_s alpha[b, s] * x[b, s, :]  -> (TB, D), lane-dense.
    o_ref[...] = jnp.sum(x * alpha[:, :, None], axis=1).astype(o_ref.dtype)


def attention_pooling(x, attn_mask, w1, b1, w2, b2, *,
                      batch_tile=None,
                      vmem_budget_bytes=20 * 1024 * 1024,
                      small_batch_fallback=False):
    """Pallas implementation of AttentionPooling.forward.

    x:          (B, S, D) float32
    attn_mask:  (B, S) float32 or None
    w1: (D, H2)   b1: (H2,)
    w2: (H2, 1)   b2: (1,)
    returns: (B, D) float32
    """
    B, S, D = x.shape
    H2 = w1.shape[1]

    # Optional: skip pad + fixed pallas_call overhead for tiny batches.
    if small_batch_fallback and B < 8:
        return _reference(x, attn_mask, w1, b1, w2, b2)

    if attn_mask is None:
        attn_mask = jnp.ones((B, S), dtype=x.dtype)
    mask = attn_mask.astype(x.dtype)

    # The in-kernel reshapes are only layout-free when S % 8 == 0; pad the
    # sequence with mask=0 rows (zero attention weight -> exact semantics).
    if S % 8 != 0:
        s_pad = _round_up(S, 8)
        x = jnp.pad(x, ((0, 0), (0, s_pad - S), (0, 0)))
        mask = jnp.pad(mask, ((0, 0), (0, s_pad - S)))
        S = s_pad

    # ---- Batch-tile selection --------------------------------------------
    # Target ~2 MiB of x HBM data per grid step; clamp to the (8-padded)
    # batch and to a VMEM budget (double-buffered, lane-padded) that leaves
    # headroom on v7x (64 MiB physical) as well as v5e/v6e.
    bytes_per_row = S * D * 4
    target = min(4096, max(8, (2 * 1024 * 1024) // max(1, bytes_per_row)))
    if batch_tile is not None:
        target = max(8, int(batch_tile))
    b8 = _round_up(B, 8)
    tb = max(8, min(_round_up(target, 8), b8))

    d_lanes = _round_up(D, 128)
    s_lanes = _round_up(S, 128)
    w_bytes = 4 * (_round_up(D, 8) * _round_up(H2, 128)       # W1
                   + 2 * 8 * _round_up(H2, 128)               # b1, W2^T
                   + 8 * 128)                                  # b2

    def _vmem_estimate(t):
        x_buf = t * S * d_lanes * 4        # S already a multiple of 8
        m_buf = t * s_lanes * 4
        o_buf = t * d_lanes * 4
        return 2 * (x_buf + m_buf + o_buf) + 2 * w_bytes      # double-buffered

    while tb > 8 and _vmem_estimate(tb) > vmem_budget_bytes:
        tb = max(8, _round_up(tb // 2, 8))

    vmem_limit = int(min(max(32 * 1024 * 1024,
                             _vmem_estimate(tb) + 8 * 1024 * 1024),
                         112 * 1024 * 1024))

    grid = (pl.cdiv(B, tb),)   # ragged last tile -> no padded copy of x

    w2t = w2.reshape(1, H2)
    b1_2d = b1.reshape(1, H2)
    b2_2d = b2.reshape(1, 1)

    cost = pl.CostEstimate(
        flops=2 * B * S * D * H2 + 2 * B * S * H2 + 2 * B * S * D + 6 * B * S,
        transcendentals=B * S * (H2 + 1),
        bytes_accessed=4 * (B * S * D + B * S + B * D + D * H2 + 2 * H2 + 1),
    )

    out = pl.pallas_call(
        _attn_pool_kernel,
        out_shape=jax.ShapeDtypeStruct((B, D), x.dtype),
        grid_spec=pltpu.PrefetchScalarGridSpec(
            num_scalar_prefetch=0,
            grid=grid,
            in_specs=[
                pl.BlockSpec((tb, S, D), lambda i: (i, 0, 0)),   # x tile
                pl.BlockSpec((tb, S), lambda i: (i, 0)),         # mask tile
                pl.BlockSpec((D, H2), lambda i: (0, 0)),         # W1 (resident)
                pl.BlockSpec((1, H2), lambda i: (0, 0)),         # b1
                pl.BlockSpec((1, H2), lambda i: (0, 0)),         # W2^T
                pl.BlockSpec((1, 1), lambda i: (0, 0)),          # b2
            ],
            out_specs=pl.BlockSpec((tb, D), lambda i: (i, 0)),
        ),
        compiler_params=pltpu.CompilerParams(
            dimension_semantics=("parallel",),   # independent batch tiles
            vmem_limit_bytes=vmem_limit,
        ),
        cost_estimate=cost,
    )(x, mask, w1, b1_2d, w2t, b2_2d)

    return out


def _reference(x, attn_mask, w1, b1, w2, b2):
    """Pure-JAX reference mirroring the PyTorch forward exactly."""
    e = jnp.tanh(x @ w1 + b1)                 # (B, S, H2)
    alpha = jnp.exp(e @ w2 + b2)              # (B, S, 1)
    if attn_mask is not None:
        alpha = alpha * attn_mask[:, :, None]
    alpha = alpha / (jnp.sum(alpha, axis=1, keepdims=True) + 1e-8)
    pooled = jnp.einsum("bsd,bso->bdo", x, alpha)   # bmm(x^T, alpha)
    return pooled.reshape(x.shape[0], -1)


if __name__ == "__main__":
    # Small shapes consistent with the module: d_h=32, hidden_size=32 -> H2=16
    B, S, D, HIDDEN = 2, 8, 32, 32
    H2 = HIDDEN // 2

    key = jax.random.PRNGKey(0)
    kx, km, k1, k2, k3, k4, kx2, km2 = jax.random.split(key, 8)

    # PyTorch-style uniform(+-1/sqrt(fan_in)) init for the Linears.
    bound1 = 1.0 / math.sqrt(D)
    w1 = jax.random.uniform(k1, (D, H2), minval=-bound1, maxval=bound1,
                            dtype=jnp.float32)
    b1 = jax.random.uniform(k2, (H2,), minval=-bound1, maxval=bound1,
                            dtype=jnp.float32)
    bound2 = 1.0 / math.sqrt(H2)
    w2 = jax.random.uniform(k3, (H2, 1), minval=-bound2, maxval=bound2,
                            dtype=jnp.float32)
    b2 = jax.random.uniform(k4, (1,), minval=-bound2, maxval=bound2,
                            dtype=jnp.float32)

    # Case 1: tiny batch (single ragged tile).
    x = jax.random.normal(kx, (B, S, D), dtype=jnp.float32)
    attn_mask = (jax.random.uniform(km, (B, S)) > 0.2).astype(jnp.float32)
    out = jax.block_until_ready(attention_pooling(x, attn_mask, w1, b1, w2, b2))
    ref = _reference(x, attn_mask, w1, b1, w2, b2)
    assert out.shape == (B, D), out.shape
    assert jnp.allclose(out, ref, atol=1e-4, rtol=1e-4), (
        f"max abs diff {jnp.max(jnp.abs(out - ref))}"
    )

    # Case 2: multi-tile grid with a ragged last tile (no wrapper padding).
    B2 = 50
    x2 = jax.random.normal(kx2, (B2, S, D), dtype=jnp.float32)
    mask2 = (jax.random.uniform(km2, (B2, S)) > 0.2).astype(jnp.float32)
    out2 = jax.block_until_ready(
        attention_pooling(x2, mask2, w1, b1, w2, b2, batch_tile=16))
    ref2 = _reference(x2, mask2, w1, b1, w2, b2)
    assert out2.shape == (B2, D), out2.shape
    assert jnp.allclose(out2, ref2, atol=1e-4, rtol=1e-4), (
        f"max abs diff {jnp.max(jnp.abs(out2 - ref2))}"
    )

    print("KERNEL_OK")
</pallas_src>

<mosaic_0001>
module attributes {stable_mosaic.version = 11 : i64} {
  func.func @_attn_pool_kernel(%arg0: i32, %arg1: memref<8x8x32xf32, #tpu.memory_space<vmem>>, %arg2: memref<8x8xf32, #tpu.memory_space<vmem>>, %arg3: memref<32x16xf32, #tpu.memory_space<vmem>>, %arg4: memref<1x16xf32, #tpu.memory_space<vmem>>, %arg5: memref<1x16xf32, #tpu.memory_space<vmem>>, %arg6: memref<1x1xf32, #tpu.memory_space<vmem>>, %arg7: memref<8x32xf32, #tpu.memory_space<vmem>>) attributes {dimension_semantics = [#tpu.dimension_semantics<parallel>], iteration_bounds = array<i64: 1>, scalar_prefetch = 0 : i64, scratch_operands = 0 : i64, tpu.core_type = #tpu.core_type<tc>, window_params = [{transform_indices = @transform_0, window_bounds = array<i64: 8, 8, 32>}, {transform_indices = @transform_1, window_bounds = array<i64: 8, 8>}, {pipeline_mode = #tpu.pipeline_mode<synchronous>, transform_indices = @transform_2, window_bounds = array<i64: 32, 16>}, {pipeline_mode = #tpu.pipeline_mode<synchronous>, transform_indices = @transform_3, window_bounds = array<i64: 1, 16>}, {pipeline_mode = #tpu.pipeline_mode<synchronous>, transform_indices = @transform_4, window_bounds = array<i64: 1, 16>}, {pipeline_mode = #tpu.pipeline_mode<synchronous>, transform_indices = @transform_5, window_bounds = array<i64: 1, 1>}, {transform_indices = @transform_6, window_bounds = array<i64: 8, 32>}]} {
    %c0 = arith.constant 0 : index
    %c0_0 = arith.constant 0 : index
    %c0_1 = arith.constant 0 : index
    %0 = vector.load %arg1[%c0, %c0_0, %c0_1] : memref<8x8x32xf32, #tpu.memory_space<vmem>>, vector<8x8x32xf32>
    %1 = vector.shape_cast %0 : vector<8x8x32xf32> to vector<64x32xf32>
    %c0_2 = arith.constant 0 : index
    %c0_3 = arith.constant 0 : index
    %2 = vector.load %arg3[%c0_2, %c0_3] : memref<32x16xf32, #tpu.memory_space<vmem>>, vector<32x16xf32>
    %cst = arith.constant dense<0.000000e+00> : vector<64x16xf32>
    %3 = tpu.matmul %1, %2, %cst {dimension_numbers = #tpu.dot_dimension_numbers<[1], [0], [0], [1], [0, 0, 1, 1], [], []>} : vector<64x32xf32>, vector<32x16xf32>, vector<64x16xf32> -> vector<64x16xf32>
    %c0_4 = arith.constant 0 : index
    %c0_5 = arith.constant 0 : index
    %4 = vector.load %arg4[%c0_4, %c0_5] : memref<1x16xf32, #tpu.memory_space<vmem>>, vector<1x16xf32>
    %5 = vector.broadcast %4 : vector<1x16xf32> to vector<64x16xf32>
    %6 = arith.addf %3, %5 : vector<64x16xf32>
    %7 = math.tanh %6 : vector<64x16xf32>
    %8 = vector.shape_cast %7 : vector<64x16xf32> to vector<8x8x16xf32>
    %c0_6 = arith.constant 0 : index
    %c0_7 = arith.constant 0 : index
    %9 = vector.load %arg5[%c0_6, %c0_7] : memref<1x16xf32, #tpu.memory_space<vmem>>, vector<1x16xf32>
    %10 = vector.shape_cast %9 : vector<1x16xf32> to vector<1x1x16xf32>
    %11 = vector.broadcast %10 : vector<1x1x16xf32> to vector<8x8x16xf32>
    %12 = arith.mulf %8, %11 : vector<8x8x16xf32>
    %cst_8 = arith.constant dense<0.000000e+00> : vector<8x8xf32>
    %13 = vector.multi_reduction <add>, %12, %cst_8 [2] : vector<8x8x16xf32> to vector<8x8xf32>
    %c0_9 = arith.constant 0 : index
    %c0_10 = arith.constant 0 : index
    %14 = vector.load %arg6[%c0_9, %c0_10] : memref<1x1xf32, #tpu.memory_space<vmem>>, vector<1x1xf32>
    %15 = vector.broadcast %14 : vector<1x1xf32> to vector<8x8xf32>
    %16 = arith.addf %13, %15 : vector<8x8xf32>
    %17 = math.exp %16 : vector<8x8xf32>
    %c0_11 = arith.constant 0 : index
    %c0_12 = arith.constant 0 : index
    %18 = vector.load %arg2[%c0_11, %c0_12] : memref<8x8xf32, #tpu.memory_space<vmem>>, vector<8x8xf32>
    %19 = arith.mulf %17, %18 : vector<8x8xf32>
    %cst_13 = arith.constant dense<0.000000e+00> : vector<8xf32>
    %20 = vector.multi_reduction <add>, %19, %cst_13 [1] : vector<8x8xf32> to vector<8xf32>
    %21 = vector.shape_cast %20 : vector<8xf32> to vector<8x1xf32>
    %cst_14 = arith.constant 9.99999993E-9 : f32
    %22 = vector.broadcast %cst_14 : f32 to vector<8x1xf32>
    %23 = arith.addf %21, %22 : vector<8x1xf32>
    %24 = tpu.reciprocal %23 {approx = true} : vector<8x1xf32> -> vector<8x1xf32>
    %25 = arith.mulf %23, %24 : vector<8x1xf32>
    %cst_15 = arith.constant 2.000000e+00 : f32
    %26 = vector.broadcast %cst_15 : f32 to vector<8x1xf32>
    %27 = arith.subf %26, %25 : vector<8x1xf32>
    %28 = arith.mulf %24, %27 : vector<8x1xf32>
    %29 = vector.broadcast %28 : vector<8x1xf32> to vector<8x8xf32>
    %30 = arith.mulf %19, %29 : vector<8x8xf32>
    %31 = vector.shape_cast %30 : vector<8x8xf32> to vector<8x8x1xf32>
    %32 = vector.broadcast %31 : vector<8x8x1xf32> to vector<8x8x32xf32>
    %33 = arith.mulf %0, %32 : vector<8x8x32xf32>
    %cst_16 = arith.constant dense<0.000000e+00> : vector<8x32xf32>
    %34 = vector.multi_reduction <add>, %33, %cst_16 [1] : vector<8x8x32xf32> to vector<8x32xf32>
    %c0_17 = arith.constant 0 : index
    %c0_18 = arith.constant 0 : index
    %35 = vector.load %arg7[%c0_17, %c0_18] : memref<8x32xf32, #tpu.memory_space<vmem>>, vector<8x32xf32>
    tpu.vector_store %arg7[%c0_17, %c0_18], %34 {strides = array<i32>} : memref<8x32xf32, #tpu.memory_space<vmem>>, vector<8x32xf32>,
    return
  }
  func.func @transform_0(%arg0: i32) -> (i32, i32, i32) {
    %c0_i32 = arith.constant 0 : i32
    %c0_i32_0 = arith.constant 0 : i32
    %c0_i32_1 = arith.constant 0 : i32
    return %arg0, %c0_i32, %c0_i32_0 : i32, i32, i32
  }
  func.func @transform_1(%arg0: i32) -> (i32, i32) {
    %c0_i32 = arith.constant 0 : i32
    %c0_i32_0 = arith.constant 0 : i32
    return %arg0, %c0_i32 : i32, i32
  }
  func.func @transform_2(%arg0: i32) -> (i32, i32) {
    %c0_i32 = arith.constant 0 : i32
    %c0_i32_0 = arith.constant 0 : i32
    %c0_i32_1 = arith.constant 0 : i32
    return %c0_i32, %c0_i32_0 : i32, i32
  }
  func.func @transform_3(%arg0: i32) -> (i32, i32) {
    %c0_i32 = arith.constant 0 : i32
    %c0_i32_0 = arith.constant 0 : i32
    %c0_i32_1 = arith.constant 0 : i32
    return %c0_i32, %c0_i32_0 : i32, i32
  }
  func.func @transform_4(%arg0: i32) -> (i32, i32) {
    %c0_i32 = arith.constant 0 : i32
    %c0_i32_0 = arith.constant 0 : i32
    %c0_i32_1 = arith.constant 0 : i32
    return %c0_i32, %c0_i32_0 : i32, i32
  }
  func.func @transform_5(%arg0: i32) -> (i32, i32) {
    %c0_i32 = arith.constant 0 : i32
    %c0_i32_0 = arith.constant 0 : i32
    %c0_i32_1 = arith.constant 0 : i32
    return %c0_i32, %c0_i32_0 : i32, i32
  }
  func.func @transform_6(%arg0: i32) -> (i32, i32) {
    %c0_i32 = arith.constant 0 : i32
    %c0_i32_0 = arith.constant 0 : i32
    return %arg0, %c0_i32 : i32, i32
  }
}

</mosaic_0001>

<bundles_post_ra>
// kernel: tpu_custom_call.1
= control target key start
LH: loop header
LB: loop body
LE: loop exit
PB: predicated region body
PF: predicated region fallthrough
CT: control target
= control target key end

     0   :  { %s787_s0 = inlined_call_operand.vmem [shape: f32[2,8,32], index: 0, kind: input, shape index: {}]   ;;  %s788_s1 = inlined_call_operand.vmem [shape: f32[2,8], index: 1, kind: input, shape index: {}]   ;;  %s789_s2 = inlined_call_operand.vmem [shape: f32[32,16], index: 2, kind: input, shape index: {}]   ;;  %s790_s3 = inlined_call_operand.vmem [shape: f32[1,16], index: 3, kind: input, shape index: {}]   ;;  %s791_s4 = inlined_call_operand.vmem [shape: f32[1,16], index: 4, kind: input, shape index: {}]   ;;  %s792_s5 = inlined_call_operand.<no memory space> [shape: f32[1,1], index: 5, kind: input, shape index: {}]   ;;  %s793_s6 = inlined_call_operand.hbm [shape: f32[2,32], index: 6, kind: output, shape index: {}]  }
   0x1   :  { %v11_v0 = vstv %s792_s5 }
   0x2   :  { %12 = vst [vmem:[#allocation2] sm:$0x1] %v11_v0 }
   0x3   :  { %13 = vsyncpa [#allocation4], 0  ;;  %v37_v1 = vld [vmem:[%s789_s2 + $0x18] sm:$0xff]  ;;  %v36_v2 = vld [vmem:[%s789_s2 + $0x10] sm:$0xff]  ;;  %v187_v4 = vlaneseq  ;;  %vm42_vm0 = vcmask 261120   ;;  %v582_v12 = vmov 0  }
   0x4   :  { %79 = vmatpush.msra.mxu0 %v37_v1  ;;  %496 = vmatpush.msra.mxu1 %v37_v1  ;;  %v35_v3 = vld [vmem:[%s789_s2 + $0x8] sm:$0xff]  ;;  %v34_v5 = vld [vmem:[%s789_s2] sm:$0xff]  ;;  %v644_v7 = vld [vmem:[%s787_s0 + $0x10] sm:$0xff]  ;;  %vm128_vm1 = vcmask 130048   ;;  %vm300_vm2 = vcmask 1041409   ;;  %vm302_vm3 = vcmask 1042434  }
   0x5   :  { %497 = vmatpush.msra.mxu2 %v37_v1  ;;  %498 = vmatpush.msra.mxu3 %v37_v1  ;;  %v639_v6 = vld [vmem:[%s787_s0] sm:$0xff]  ;;  %v188_v9 = vshrl.u32 %v187_v4, 7  ;;  %v657_v10 = vld [vmem:[%s787_s0 + $0x30] sm:$0xff]  ;;  %v674_v14 = vld [vmem:[%s787_s0 + $0x8] sm:$0xff]  ;;  %vm304_vm4 = vcmask 1043459   ;;  %vm306_vm5 = vcmask 1044484  }
   0x6   :  { %80 = vmatpush.msra.mxu0 %v36_v2  ;;  %499 = vmatpush.msra.mxu1 %v36_v2  ;;  %v649_v8 = vld [vmem:[%s787_s0 + $0x20] sm:$0xff]  ;;  %v679_v15 = vld [vmem:[%s787_s0 + $0x28] sm:$0xff]  ;;  %v684_v16 = vld [vmem:[%s787_s0 + $0x18] sm:$0xff]  ;;  %vm308_vm6 = vcmask 1045509   ;;  %vm310_vm7 = vcmask 1046534   ;;  %vm312_vm8 = vcmask 1047559  }
   0x7   :  { %500 = vmatpush.msra.mxu2 %v36_v2  ;;  %501 = vmatpush.msra.mxu3 %v36_v2  ;;  %v669_v13 = vld [vmem:[%s788_s1] sm:$0xff]  ;;  %v692_v18 = vld [vmem:[%s787_s0 + $0x38] sm:$0xff]  ;;  %vm315_vm9 = vcmask 64512  }
   0x8   :  { %81 = vmatpush.msra.mxu0 %v35_v3  ;;  %502 = vmatpush.msra.mxu1 %v35_v3  ;;  %v186_v17 = vperm.slane %v669_v13, 0  ;;  %v520_v19 = vld [vmem:[%s790_s3] ss:$0 sm:$0xff]  ;;  %v200_v61 = vperm.slane %v669_v13, 2  ;;  %v207_v62 = vperm.slane %v669_v13, 3  ;;  %v221_v63 = vperm.slane %v669_v13, 5 }
   0x9   :  { %503 = vmatpush.msra.mxu2 %v35_v3  ;;  %504 = vmatpush.msra.mxu3 %v35_v3  ;;  %v519_v11 = vld [vmem:[#allocation2] ss:$0 sm:$0xff]  ;;  %v193_v0 = vperm.slane %v669_v13, 1  ;;  %v214_v1 = vperm.slane %v669_v13, 4  ;;  %v235_v2 = vperm.slane %v669_v13, 7  ;;  %v228_v3 = vperm.slane %v669_v13, 6 }
   0xa   :  { %82 = vmatpush.msra.mxu0 %v34_v5  ;;  %505 = vmatpush.msra.mxu1 %v34_v5  ;;  %v521_v24 = vld [vmem:[%s791_s4] ss:$0 sm:$0xff] }
   0xb   :  { %506 = vmatpush.msra.mxu2 %v34_v5  ;;  %488 = vmatmul.msk.f32.vlgmr.msra.gmra.mxu0 %vm42_vm0, %v639_v6 }
   0xc   :  { %490 = vmatmul.msk.f32.vlgmr.msra.gmra.mxu1 %vm42_vm0, %v644_v7  ;;  %492 = vmatmul.msk.f32.vlgmr.msra.gmra.mxu2 %vm42_vm0, %v649_v8 }
   0xd   :  { %507 = vmatpush.msra.mxu3 %v34_v5  ;;  %513 = vset.pattern.permute.xlu2 %v188_v9 }
   0xe   :  { %494 = vmatmul.msk.f32.vlgmr.msra.gmra.mxu3 %vm42_vm0, %v657_v10  ;;  %512 = vset.pattern.permute.xlu1 %v582_v12 }
   0xf   :  { %157 = vperm.xlu1 %512, %v519_v11   ;;  %514 = vset.pattern.permute.xlu0 %v188_v9 }
  0x13   :  { %489 = vmatmul.msk.f32.gmra.mxu0 %vm42_vm0, %v674_v14 }
  0x14   :  { %493 = vmatmul.msk.f32.gmra.mxu2 %vm42_vm0, %v679_v15  ;;  %491 = vmatmul.msk.f32.gmra.mxu1 %vm42_vm0, %v684_v16 }
  0x15   :  { %191 = vperm.xlu2 %513, %v186_v17  }
  0x16   :  { %495 = vmatmul.msk.f32.gmra.mxu3 %vm42_vm0, %v692_v18 }
  0x17   :  { %515 = vset.pattern.permute.xlu1 %v188_v9 }
  0x6f   :  { %v192_v5 = vpop.permute.xlu2 %191 }
  0x81   :  { %v158_v9 = vpop.permute.xlu1 %157 }
  0x88   :  { %v84_v20 = vpop.f32.mrf.mxu0 }
  0x89   :  { %v85_v21 = vadd.f32 %v520_v19, %v84_v20  ;;  %v90_v22 = vpop.f32.mrf.mxu1 }
  0x8a   :  { %v91_v23 = vadd.f32 %v520_v19, %v90_v22 }
  0x8b   :  { %522 = vtanh.f32 %v85_v21 }
  0x8c   :  { %524 = vtanh.f32 %v91_v23 }
  0x8f   :  { %v96_v25 = vpop.f32.mrf.mxu2 }
  0x90   :  { %v97_v26 = vadd.f32 %v520_v19, %v96_v25  ;;  %v87_v27 = vpop.f32.mrf.mxu0 }
  0x91   :  { %v523_v28 = vpop.eup %522  ;;  %v88_v29 = vadd.f32 %v520_v19, %v87_v27  ;;  %v102_v30 = vpop.f32.mrf.mxu3 }
  0x92   :  { %v525_v31 = vpop.eup %524  ;;  %526 = vtanh.f32 %v97_v26  ;;  %v120_v32 = vmul.f32 %v523_v28, %v521_v24  ;;  %v103_v33 = vadd.f32 %v520_v19, %v102_v30  ;;  %v93_v37 = vpop.f32.mrf.mxu1 }
  0x93   :  { %528 = vtanh.f32 %v88_v29  ;;  %v122_v34 = vmul.f32 %v525_v31, %v521_v24  ;;  %v94_v41 = vadd.f32 %v520_v19, %v93_v37 }
  0x94   :  { %v129_v35 = vsel %vm128_vm1, %v120_v32, 0.0  ;;  %530 = vtanh.f32 %v103_v33 }
  0x95   :  { %v135_v36 = vsel %vm128_vm1, %v122_v34, 0.0  ;;  %130 = vadd.xlane.f32.xlu0 %v129_v35 }
  0x96   :  { %136 = vadd.xlane.f32.xlu1 %v135_v36 }
  0x97   :  { %v99_v38 = vpop.f32.mrf.mxu2 }
  0x98   :  { %v527_v39 = vpop.eup %526  ;;  %v100_v40 = vadd.f32 %v520_v19, %v99_v38 }
  0x99   :  { %v529_v42 = vpop.eup %528  ;;  %v124_v43 = vmul.f32 %v527_v39, %v521_v24  ;;  %v105_v44 = vpop.f32.mrf.mxu3 }
  0x9a   :  { %v531_v45 = vpop.eup %530  ;;  %532 = vtanh.f32 %v100_v40  ;;  %v121_v46 = vmul.f32 %v529_v42, %v521_v24  ;;  %v106_v47 = vadd.f32 %v520_v19, %v105_v44 }
  0x9b   :  { %v141_v48 = vsel %vm128_vm1, %v124_v43, 0.0  ;;  %534 = vtanh.f32 %v94_v41  ;;  %v126_v50 = vmul.f32 %v531_v45, %v521_v24 }
  0x9c   :  { %142 = vadd.xlane.f32.xlu2 %v141_v48  ;;  %v132_v49 = vsel %vm128_vm1, %v121_v46, 0.0  ;;  %536 = vtanh.f32 %v106_v47 }
  0x9d   :  { %133 = vadd.xlane.f32.xlu0 %v132_v49  ;;  %v147_v52 = vsel %vm128_vm1, %v126_v50, 0.0 }
  0xa0   :  { %v533_v51 = vpop.eup %532 }
  0xa1   :  { %v125_v53 = vmul.f32 %v533_v51, %v521_v24  ;;  %v535_v54 = vpop.eup %534 }
  0xa2   :  { %v537_v55 = vpop.eup %536  ;;  %v123_v57 = vmul.f32 %v535_v54, %v521_v24 }
  0xa3   :  { %v144_v56 = vsel %vm128_vm1, %v125_v53, 0.0  ;;  %v127_v58 = vmul.f32 %v537_v55, %v521_v24 }
  0xa4   :  { %148 = vadd.xlane.f32.xlu2 %v147_v52  ;;  %v138_v59 = vsel %vm128_vm1, %v123_v57, 0.0 }
  0xa5   :  { %145 = vadd.xlane.f32.xlu0 %v144_v56  ;;  %v150_v60 = vsel %vm128_vm1, %v127_v58, 0.0 }
  0xac   :  { %139 = vadd.xlane.f32.xlu2 %v138_v59 }
  0xad   :  { %151 = vadd.xlane.f32.xlu0 %v150_v60 }
  0xaf   :  { %205 = vperm.xlu1 %515, %v200_v61  }
  0xb7   :  { %212 = vperm.xlu1 %515, %v207_v62  }
  0xbf   :  { %226 = vperm.xlu1 %515, %v221_v63  }
  0xc1   :  { %198 = vperm.xlu0 %514, %v193_v0  }
  0xc4   :  { %219 = vperm.xlu2 %513, %v214_v1   ;;  %v291_v1 = vand.u32 127, %v187_v4 }
  0xc7   :  { %240 = vperm.xlu1 %515, %v235_v2  }
  0xc9   :  { %517 = vset.pattern.permute.xlu0 %v582_v12 }
  0xcc   :  { %233 = vperm.xlu2 %513, %v228_v3  }
  0xcf   :  { %518 = vset.pattern.permute.xlu1 %v582_v12 }
  0xd4   :  { %516 = vset.pattern.permute.xlu2 %v582_v12 }
 0x108   :  { %v131_v11 = vpop.xlane.xlu0 %130 }
 0x109   :  { %v160_v17 = vadd.f32 %v158_v9, %v131_v11  ;;  %v137_v21 = vpop.xlane.xlu1 %136 }
 0x10a   :  { %v162_v23 = vadd.f32 %v158_v9, %v137_v21 }
 0x10b   :  { %v168_v19 = vmul.f32 1.442695, %v160_v17 }
 0x10c   :  { %v172_v13 = vmul.f32 1.442695, %v162_v23 }
 0x10d   :  { %538 = vpow2.f32 %v168_v19 }
 0x10e   :  { %540 = vpow2.f32 %v172_v13 }
 0x10f   :  { %v143_v20 = vpop.xlane.xlu2 %142 }
 0x110   :  { %v134_v24 = vpop.xlane.xlu0 %133  ;;  %v164_v27 = vadd.f32 %v158_v9, %v143_v20 }
 0x111   :  { %v161_v36 = vadd.f32 %v158_v9, %v134_v24 }
 0x112   :  { %v176_v12 = vmul.f32 1.442695, %v164_v27 }
 0x113   :  { %v539_v22 = vpop.eup %538  ;;  %v170_v42 = vmul.f32 1.442695, %v161_v36 }
 0x114   :  { %v724_v25 = vmul.f32 %v539_v22, %v192_v5  ;;  %v541_v31 = vpop.eup %540  ;;  %542 = vpow2.f32 %v176_v12 }
 0x116   :  { %267 = vperm.xlu2 %516, %v724_v25  }
 0x117   :  { %v149_v26 = vpop.xlane.xlu2 %148 }
 0x118   :  { %v146_v28 = vpop.xlane.xlu0 %145  ;;  %v166_v47 = vadd.f32 %v158_v9, %v149_v26 }
 0x119   :  { %v165_v35 = vadd.f32 %v158_v9, %v146_v28 }
 0x11a   :  { %v543_v37 = vpop.eup %542  ;;  %v180_v50 = vmul.f32 1.442695, %v166_v47 }
 0x11b   :  { %v178_v38 = vmul.f32 1.442695, %v165_v35 }
 0x11f   :  { %v140_v29 = vpop.xlane.xlu2 %139 }
 0x120   :  { %v163_v30 = vadd.f32 %v158_v9, %v140_v29  ;;  %v152_v40 = vpop.xlane.xlu0 %151 }
 0x121   :  { %v206_v32 = vpop.permute.xlu1 %205  ;;  %v167_v45 = vadd.f32 %v158_v9, %v152_v40 }
 0x122   :  { %v174_v33 = vmul.f32 1.442695, %v163_v30  ;;  %v727_v34 = vmul.f32 %v541_v31, %v206_v32 }
 0x123   :  { %v182_v48 = vmul.f32 1.442695, %v167_v45 }
 0x124   :  { %544 = vpow2.f32 %v174_v33  ;;  %273 = vperm.xlu0 %517, %v727_v34  }
 0x125   :  { %546 = vpow2.f32 %v178_v38 }
 0x126   :  { %548 = vpow2.f32 %v170_v42 }
 0x127   :  { %v220_v39 = vpop.permute.xlu2 %219  ;;  %550 = vpow2.f32 %v182_v48 }
 0x128   :  { %v730_v41 = vmul.f32 %v543_v37, %v220_v39  ;;  %552 = vpow2.f32 %v180_v50 }
 0x129   :  { %v213_v43 = vpop.permute.xlu1 %212 }
 0x12a   :  { %v545_v44 = vpop.eup %544  ;;  %279 = vperm.xlu1 %518, %v730_v41  }
 0x12b   :  { %v733_v46 = vmul.f32 %v545_v44, %v213_v43  ;;  %v547_v49 = vpop.eup %546 }
 0x12c   :  { %v549_v53 = vpop.eup %548 }
 0x12d   :  { %276 = vperm.xlu2 %516, %v733_v46   ;;  %v551_v56 = vpop.eup %550 }
 0x12e   :  { %v553_v60 = vpop.eup %552 }
 0x12f   :  { %v234_v57 = vpop.permute.xlu2 %233 }
 0x130   :  { %v741_v61 = vmul.f32 %v553_v60, %v234_v57 }
 0x131   :  { %v227_v51 = vpop.permute.xlu1 %226 }
 0x132   :  { %v736_v52 = vmul.f32 %v547_v49, %v227_v51 }
 0x133   :  { %v199_v54 = vpop.permute.xlu0 %198 }
 0x134   :  { %v251_v55 = vmul.f32 %v549_v53, %v199_v54 }
 0x135   :  { %282 = vperm.xlu2 %516, %v736_v52  }
 0x136   :  { %270 = vperm.xlu1 %518, %v251_v55  }
 0x139   :  { %v241_v58 = vpop.permute.xlu1 %240 }
 0x13a   :  { %v739_v59 = vmul.f32 %v551_v56, %v241_v58 }
 0x13c   :  { %288 = vperm.xlu0 %517, %v739_v59  }
 0x13e   :  { %285 = vperm.xlu1 %518, %v741_v61  }
 0x170   :  { %v268_v62 = vpop.permute.xlu2 %267 }
 0x171   :  { %v292_v5 = vperm.slane %v268_v62, %v291_v1 }
 0x187   :  { %v277_v0 = vpop.permute.xlu2 %276 }
 0x188   :  { %v295_v17 = vperm.slane %v277_v0, %v291_v1 }
 0x18f   :  { %v283_v21 = vpop.permute.xlu2 %282 }
 0x190   :  { %v297_v13 = vperm.slane %v283_v21, %v291_v1 }
 0x196   :  { %v274_v2 = vpop.permute.xlu0 %273 }
 0x197   :  { %v294_v11 = vperm.slane %v274_v2, %v291_v1 }
 0x19c   :  { %v280_v63 = vpop.permute.xlu1 %279 }
 0x19d   :  { %v296_v22 = vperm.slane %v280_v63, %v291_v1 }
 0x1a8   :  { %v271_v3 = vpop.permute.xlu1 %270 }
 0x1a9   :  { %v293_v9 = vperm.slane %v271_v3, %v291_v1 }
 0x1ab   :  { %v301_v19 = vsel %vm300_vm2, %v293_v9, %v292_v5 }
 0x1ac   :  { %v303_v20 = vsel %vm302_vm3, %v294_v11, %v301_v19 }
 0x1ad   :  { %v305_v23 = vsel %vm304_vm4, %v295_v17, %v303_v20 }
 0x1ae   :  { %v289_v24 = vpop.permute.xlu0 %288  ;;  %v307_v4 = vsel %vm306_vm5, %v296_v22, %v305_v23 }
 0x1af   :  { %v299_v12 = vperm.slane %v289_v24, %v291_v1  ;;  %v309_v28 = vsel %vm308_vm6, %v297_v13, %v307_v4 }
 0x1b0   :  { %v286_v26 = vpop.permute.xlu1 %285 }
 0x1b1   :  { %v298_v27 = vperm.slane %v286_v26, %v291_v1 }
 0x1b3   :  { %v311_v29 = vsel %vm310_vm7, %v298_v27, %v309_v28 }
 0x1b4   :  { %v313_v30 = vsel %vm312_vm8, %v299_v12, %v311_v29 }
 0x1b5   :  { %v316_v31 = vsel %vm315_vm9, %v313_v30, 0.0 }
 0x1b6   :  { %317 = vadd.xlane.f32.xlu2 %v316_v31 }
 0x229   :  { %v318_v32 = vpop.xlane.xlu2 %317 }
 0x22a   :  { %v319_v33 = vadd.f32 1e-08, %v318_v32 }
 0x22c   :  { %554 = vrcp.f32 %v319_v33 }
 0x232   :  { %v555_v35 = vpop.eup %554 }
 0x233   :  { %v321_v36 = vmul.f32 %v555_v35, %v319_v33 }
 0x235   :  { %v322_v37 = vsub.f32 2.0, %v321_v36 }
 0x237   :  { %v323_v38 = vmul.f32 %v555_v35, %v322_v37 }
 0x239   :  { %v326_v39 = vperm.slane %v323_v38, 1  ;;  %v325_v40 = vperm.slane %v323_v38, 0  ;;  %v328_v44 = vperm.slane %v323_v38, 3  ;;  %v327_v45 = vperm.slane %v323_v38, 2 }
 0x23a   :  { %v330_v49 = vperm.slane %v323_v38, 5  ;;  %v329_v50 = vperm.slane %v323_v38, 4  ;;  %v332_v54 = vperm.slane %v323_v38, 7 }
 0x23b   :  { %v342_v42 = vmul.f32 %v326_v39, %v251_v55  ;;  %v341_v43 = vmul.f32 %v325_v40, %v724_v25  ;;  %v344_v47 = vmul.f32 %v328_v44, %v733_v46  ;;  %v343_v48 = vmul.f32 %v327_v45, %v727_v34 }
 0x23c   :  { %v346_v51 = vmul.f32 %v330_v49, %v736_v52  ;;  %v345_v53 = vmul.f32 %v329_v50, %v730_v41  ;;  %v331_v25 = vperm.slane %v323_v38, 6  ;;  %v348_v55 = vmul.f32 %v332_v54, %v739_v59 }
 0x23d   :  { %356 = vperm.xlu0 %517, %v342_v42   ;;  %351 = vperm.xlu1 %518, %v341_v43  }
 0x23e   :  { %v347_v56 = vmul.f32 %v331_v25, %v741_v61 }
 0x245   :  { %366 = vperm.xlu0 %517, %v344_v47   ;;  %361 = vperm.xlu1 %518, %v343_v48  }
 0x24d   :  { %376 = vperm.xlu0 %517, %v346_v51   ;;  %371 = vperm.xlu1 %518, %v345_v53  }
 0x255   :  { %386 = vperm.xlu0 %517, %v348_v55   ;;  %381 = vperm.xlu1 %518, %v347_v56  }
 0x2af   :  { %v357_v46 = vpop.permute.xlu0 %356  ;;  %v352_v34 = vpop.permute.xlu1 %351 }
 0x2b0   :  { %v390_v57 = vmul.f32 %v357_v46, %v674_v14  ;;  %v389_v58 = vmul.f32 %v352_v34, %v639_v6 }
 0x2b2   :  { %v404_v52 = vsel %vm42_vm0, %v390_v57, 0.0  ;;  %v397_v41 = vsel %vm42_vm0, %v389_v58, 0.0 }
 0x2b3   :  { %v405_v60 = vrot.slane %v404_v52, 4  ;;  %v398_v62 = vrot.slane %v397_v41, 4 }
 0x2b5   :  { %v406_v1 = vadd.f32 %v405_v60, %v404_v52  ;;  %v399_v2 = vadd.f32 %v398_v62, %v397_v41 }
 0x2b7   :  { %v367_v63 = vpop.permute.xlu0 %366  ;;  %v362_v0 = vpop.permute.xlu1 %361  ;;  %v407_v9 = vrot.slane %v406_v1, 2  ;;  %v400_v11 = vrot.slane %v399_v2, 2 }
 0x2b8   :  { %v392_v59 = vmul.f32 %v367_v63, %v684_v16  ;;  %v391_v61 = vmul.f32 %v362_v0, %v644_v7 }
 0x2b9   :  { %v408_v7 = vadd.f32 %v407_v9, %v406_v1  ;;  %v401_v24 = vadd.f32 %v400_v11, %v399_v2 }
 0x2ba   :  { %v418_v3 = vsel %vm42_vm0, %v392_v59, 0.0  ;;  %v411_v14 = vsel %vm42_vm0, %v391_v61, 0.0 }
 0x2bb   :  { %v419_v5 = vrot.slane %v418_v3, 4  ;;  %v412_v6 = vrot.slane %v411_v14, 4  ;;  %v409_v29 = vrot.slane %v408_v7, 1  ;;  %v402_v30 = vrot.slane %v401_v24, 1 }
 0x2bd   :  { %v413_v17 = vadd.f32 %v412_v6, %v411_v14  ;;  %v420_v19 = vadd.f32 %v419_v5, %v418_v3  ;;  %v410_v40 = vadd.f32 %v409_v29, %v408_v7  ;;  %v403_v42 = vadd.f32 %v402_v30, %v401_v24 }
 0x2bf   :  { %v414_v20 = vrot.slane %v413_v17, 2  ;;  %v377_v21 = vpop.permute.xlu0 %376  ;;  %v372_v22 = vpop.permute.xlu1 %371  ;;  %v421_v4 = vrot.slane %v420_v19, 2  ;;  %v461_v55 = vsel %vm300_vm2, %v410_v40, %v403_v42 }
 0x2c0   :  { %v394_v23 = vmul.f32 %v377_v21, %v679_v15  ;;  %v393_v16 = vmul.f32 %v372_v22, %v649_v8 }
 0x2c1   :  { %v415_v27 = vadd.f32 %v414_v20, %v413_v17  ;;  %v422_v33 = vadd.f32 %v421_v4, %v420_v19 }
 0x2c2   :  { %v432_v13 = vsel %vm42_vm0, %v394_v23, 0.0  ;;  %v425_v26 = vsel %vm42_vm0, %v393_v16, 0.0 }
 0x2c3   :  { %v433_v12 = vrot.slane %v432_v13, 4  ;;  %v426_v28 = vrot.slane %v425_v26, 4  ;;  %v416_v35 = vrot.slane %v415_v27, 1  ;;  %v423_v44 = vrot.slane %v422_v33, 1 }
 0x2c5   :  { %v434_v31 = vadd.f32 %v433_v12, %v432_v13  ;;  %v427_v32 = vadd.f32 %v426_v28, %v425_v26  ;;  %v417_v49 = vadd.f32 %v416_v35, %v415_v27 }
 0x2c7   :  { %v435_v36 = vrot.slane %v434_v31, 2  ;;  %v428_v15 = vrot.slane %v427_v32, 2  ;;  %v387_v37 = vpop.permute.xlu0 %386  ;;  %v382_v8 = vpop.permute.xlu1 %381 }
 0x2c8   :  { %v396_v38 = vmul.f32 %v387_v37, %v692_v18  ;;  %v395_v39 = vmul.f32 %v382_v8, %v657_v10  ;;  %v424_v18 = vadd.f32 %v423_v44, %v422_v33  ;;  %v462_v10 = vsel %vm302_vm3, %v417_v49, %v461_v55 }
 0x2c9   :  { %v429_v43 = vadd.f32 %v428_v15, %v427_v32  ;;  %v436_v45 = vadd.f32 %v435_v36, %v434_v31 }
 0x2ca   :  { %v446_v47 = vsel %vm42_vm0, %v396_v38, 0.0  ;;  %v439_v48 = vsel %vm42_vm0, %v395_v39, 0.0  ;;  %v463_v60 = vsel %vm304_vm4, %v424_v18, %v462_v10 }
 0x2cb   :  { %v430_v50 = vrot.slane %v429_v43, 1  ;;  %v447_v51 = vrot.slane %v446_v47, 4  ;;  %v440_v53 = vrot.slane %v439_v48, 4  ;;  %v437_v56 = vrot.slane %v436_v45, 1 }
 0x2cd   :  { %v448_v54 = vadd.f32 %v447_v51, %v446_v47  ;;  %v441_v25 = vadd.f32 %v440_v53, %v439_v48  ;;  %v431_v46 = vadd.f32 %v430_v50, %v429_v43  ;;  %v438_v41 = vadd.f32 %v437_v56, %v436_v45 }
 0x2cf   :  { %v449_v34 = vrot.slane %v448_v54, 2  ;;  %v442_v57 = vrot.slane %v441_v25, 2  ;;  %v464_v62 = vsel %vm306_vm5, %v431_v46, %v463_v60 }
 0x2d0   :  { %v465_v1 = vsel %vm308_vm6, %v438_v41, %v464_v62 }
 0x2d1   :  { %v450_v58 = vadd.f32 %v449_v34, %v448_v54  ;;  %v443_v52 = vadd.f32 %v442_v57, %v441_v25 }
 0x2d3   :  { %v451_v63 = vrot.slane %v450_v58, 1  ;;  %v444_v0 = vrot.slane %v443_v52, 1 }
 0x2d5   :  { %v452_v59 = vadd.f32 %v451_v63, %v450_v58  ;;  %v445_v61 = vadd.f32 %v444_v0, %v443_v52 }
 0x2d7   :  { %v466_v2 = vsel %vm310_vm7, %v445_v61, %v465_v1 }
 0x2d8   :  { %v467_v3 = vsel %vm312_vm8, %v452_v59, %v466_v2 }
 0x2d9   :  { %469 = vst.msk [vmem:[#allocation3] sm:$0xff] %vm42_vm0, %v467_v3 }
 0x2da   :  { %473 = vsyncadd [#allocation4], 96  ;;  %s476_s25 = sshll.u32 %s793_s6, 4  ;;  %s583_s26 = smov [#allocation3]   ;;  %s477_s25 = int_to_ptr.hbm [resolvable:$true] %s476_s25 }
 0x2db   :  { %s474_s27 = sshll.u32 %s583_s26, 4  ;;  %s584_s28 = smov 32   ;;  %s475_s27 = int_to_ptr.vmem [resolvable:$true] %s474_s27 }
 0x2dc   :  { %s585_s5 = smov 2  }
 0x2dd   :  { %482 = dma.vmem_to_hbm [thread:$0]  %s475_s27, 32, %s477_s25, [#allocation4], %s584_s28, %s584_s28, %s585_s5  }
 0x2de   :  { %580 = dma.done.wait [#allocation4], 128  }
 0x2df   :  { %581 = vsyncadd [#allocation4], 4294967168 }
 0x2e0   :  { %487 = vsyncpa [#allocation4], 1 }

</bundles_post_ra>
